<compile_context>
chip_gen: v6e
topology: v6e:2x2x1
jax: 0.10.0
libtpu: 0.0.40
codegen_flags: <defaults>
</compile_context>

<pallas_src>
import math

import jax
import jax.numpy as jnp
from jax.experimental import pallas as pl
from jax.experimental.pallas import tpu as pltpu


def _round_up(x, m):
    return (x + m - 1) // m * m


# ---------------------------------------------------------------------------
# Kernel
# ---------------------------------------------------------------------------
def _logit_fc_kernel(x_ref, w1_ref, b1_ref, w2_ref, b2_ref, o_ref, h_ref):
    """Fused head: Linear -> GeLU(erf) -> LayerNorm (affine pre-folded) -> Linear.

    Grid = (batch tiles, output-column tiles).  The first Linear + GeLU + LN
    are computed once per batch tile (at j == 0) and cached in VMEM scratch
    (bf16); every j step then runs one MXU N-tile of the second Linear.
    """
    @pl.when(pl.program_id(1) == 0)
    def _():
        x = x_ref[...]                                            # [TB, H] f32
        # Linear(H -> 2H): bf16 MXU inputs, f32 accumulation.
        h = jnp.dot(x.astype(jnp.bfloat16), w1_ref[...],
                    preferred_element_type=jnp.float32)
        h = h + b1_ref[...]                                       # [TB, 2H] f32
        # GeLU (exact erf form, as in UNITER's GeLU) -- keep f32.
        h = 0.5 * h * (1.0 + jax.lax.erf(h * (1.0 / math.sqrt(2.0))))
        # BertLayerNorm over last dim, eps=1e-12 (biased variance), f32.
        # gamma/beta were folded into W2/b2 offline (exact), so no affine here.
        mean = jnp.mean(h, axis=-1, keepdims=True)
        diff = h - mean
        var = jnp.mean(diff * diff, axis=-1, keepdims=True)
        h = diff * jax.lax.rsqrt(var + 1e-12)
        h_ref[...] = h.astype(h_ref.dtype)                        # cache bf16

    # Linear(2H -> block_n): bf16 MXU inputs, f32 accumulation.
    out = jnp.dot(h_ref[...], w2_ref[...], preferred_element_type=jnp.float32)
    o_ref[...] = (out + b2_ref[...]).astype(o_ref.dtype)


# ---------------------------------------------------------------------------
# pallas_call wrapper
# ---------------------------------------------------------------------------
def _run_logit_fc(x, w1, b1, w2, b2, *, block_b, block_n, single_buffer):
    B_pad, H = x.shape
    H2 = w1.shape[1]
    C_pad = w2.shape[1]
    grid = (B_pad // block_b, C_pad // block_n)

    const = lambda i, j: (0, 0)
    # Grid-invariant operands: single-buffer to halve their VMEM footprint.
    wkw = dict(pipeline_mode=pl.Buffered(1)) if single_buffer else {}

    flops = 2 * B_pad * H * H2 + 2 * B_pad * H2 * C_pad
    bytes_accessed = (x.size * 4 + w1.size * 2 + b1.size * 4
                      + w2.size * 2 + b2.size * 4 + B_pad * C_pad * 4)
    cost = pl.CostEstimate(flops=flops, transcendentals=B_pad * H2,
                           bytes_accessed=bytes_accessed)

    # VMEM footprint: x (x2), W1/b1 (x1 or x2), W2/b2 tiles (x2), out (x2),
    # bf16 LN scratch, plus headroom for the f32 [block_b, 2H] temporaries.
    wbuf = 1 if single_buffer else 2
    vmem = (2 * block_b * H * 4
            + wbuf * (H * H2 * 2 + H2 * 4)
            + 2 * (H2 * block_n * 2 + block_n * 4)
            + 2 * block_b * block_n * 4
            + block_b * H2 * 2
            + 4 * block_b * H2 * 4)
    vmem_limit = int(min(_round_up(vmem, 1 << 20) + (8 << 20), 96 << 20))

    return pl.pallas_call(
        _logit_fc_kernel,
        out_shape=jax.ShapeDtypeStruct((B_pad, C_pad), jnp.float32),
        grid_spec=pltpu.PrefetchScalarGridSpec(
            num_scalar_prefetch=0,
            grid=grid,
            in_specs=[
                pl.BlockSpec((block_b, H), lambda i, j: (i, 0)),   # pooled tile
                pl.BlockSpec((H, H2), const, **wkw),               # W1 (bf16)
                pl.BlockSpec((1, H2), const, **wkw),               # b1
                pl.BlockSpec((H2, block_n), lambda i, j: (0, j)),  # W2 N-tile
                pl.BlockSpec((1, block_n), lambda i, j: (0, j)),   # b2 N-tile
            ],
            out_specs=pl.BlockSpec((block_b, block_n), lambda i, j: (i, j)),
            scratch_shapes=[pltpu.VMEM((block_b, H2), jnp.bfloat16)],
        ),
        compiler_params=pltpu.CompilerParams(
            dimension_semantics=("parallel", "arbitrary"),
            vmem_limit_bytes=vmem_limit,
        ),
        cost_estimate=cost,
    )(x, w1, b1, w2, b2)


def prepare_params(w1, b1, gamma, beta, w2, b2):
    """One-time (init-time) weight prep, hoisted out of the serving path:
    fold the LayerNorm affine into the second Linear (exact), pad the class
    dim to a lane-dense MXU N-tile multiple, and cast big weights to bf16."""
    C = w2.shape[1]
    block_n = 128 if C <= 128 else 256     # fill the 256-wide MXU on v6e/v7x
    C_pad = _round_up(C, block_n)

    gamma = jnp.reshape(gamma, (-1,))
    beta = jnp.reshape(beta, (-1,))
    w2f = gamma[:, None] * w2                         # W2' = diag(gamma) @ W2
    b2f = jnp.reshape(b2, (1, -1)) + beta[None, :] @ w2   # b2' = b2 + beta @ W2
    if C_pad != C:
        w2f = jnp.pad(w2f, ((0, 0), (0, C_pad - C)))
        b2f = jnp.pad(b2f, ((0, 0), (0, C_pad - C)))

    return dict(
        w1=w1.astype(jnp.bfloat16),
        b1=jnp.reshape(b1, (1, -1)).astype(jnp.float32),
        w2=w2f.astype(jnp.bfloat16),
        b2=b2f.astype(jnp.float32),
        num_class=int(C),
        block_n=int(block_n),
    )


def logit_fc(pooled, params):
    """pooled: [B, H] f32 -> logits: [B, num_class] f32."""
    B, H = pooled.shape
    C = params["num_class"]
    block_n = params["block_n"]
    C_pad = params["w2"].shape[1]

    # Batch tiling: multiple of 16 (bf16 sublane packing), capped at 128.
    # When the column grid is trivial and the batch fits one tile, split the
    # batch so v7x's second TensorCore gets work (harmless on v5e/v6e).
    block_b = min(128, _round_up(B, 16))
    if C_pad // block_n == 1 and B > 16 and _round_up(B, 16) <= 128:
        block_b = _round_up((B + 1) // 2, 16)
    B_pad = _round_up(B, block_b)

    x = pooled
    if B_pad != B:
        x = jnp.pad(x, ((0, B_pad - B), (0, 0)))

    args = (x, params["w1"], params["b1"], params["w2"], params["b2"])
    kw = dict(block_b=block_b, block_n=block_n)
    try:
        out = _run_logit_fc(*args, single_buffer=True, **kw)
        out = jax.block_until_ready(out)
    except Exception:
        # Fallback for Pallas builds that reject pl.Buffered(1) single-buffering.
        out = _run_logit_fc(*args, single_buffer=False, **kw)
    return out[:B, :C]


# ---------------------------------------------------------------------------
# Pure-JAX reference (true f32 module semantics: Linear -> erf-GeLU -> LN -> Linear)
# ---------------------------------------------------------------------------
def reference(pooled, w1, b1, gamma, beta, w2, b2):
    h = pooled @ w1 + b1
    h = 0.5 * h * (1.0 + jax.lax.erf(h / jnp.sqrt(2.0)))
    mean = jnp.mean(h, axis=-1, keepdims=True)
    var = jnp.mean((h - mean) ** 2, axis=-1, keepdims=True)
    h = (h - mean) * jax.lax.rsqrt(var + 1e-12) * gamma + beta
    return h @ w2 + b2


if __name__ == "__main__":
    B, HID, NUM_CLASS = 8, 32, 10

    key = jax.random.PRNGKey(0)
    k_pool, k1, k2, k3, k4 = jax.random.split(key, 5)

    # Stand-in for the UNITER/BERT backbone's pooled_output.
    pooled = jax.random.normal(k_pool, (B, HID), jnp.float32)

    # Head params (init_bert_weights: normal std=0.02, LN gamma=1 / beta=0).
    # gamma/beta are perturbed slightly here so the LN-affine fold is exercised.
    w1 = jax.random.normal(k1, (HID, 2 * HID), jnp.float32) * 0.02
    b1 = jnp.zeros((2 * HID,), jnp.float32)
    gamma = 1.0 + 0.1 * jax.random.normal(k3, (2 * HID,), jnp.float32)
    beta = 0.1 * jax.random.normal(k4, (2 * HID,), jnp.float32)
    w2 = jax.random.normal(k2, (2 * HID, NUM_CLASS), jnp.float32) * 0.02
    b2 = jnp.zeros((NUM_CLASS,), jnp.float32)

    params = prepare_params(w1, b1, gamma, beta, w2, b2)

    logits = logit_fc(pooled, params)
    logits = jax.block_until_ready(logits)

    ref = reference(pooled, w1, b1, gamma, beta, w2, b2)
    assert logits.shape == (B, NUM_CLASS)
    err = jnp.max(jnp.abs(logits - ref))
    assert jnp.allclose(logits, ref, atol=2e-2, rtol=2e-2), f"max err {err}"

    print("KERNEL_OK")
</pallas_src>

<mosaic_0001>
module attributes {stable_mosaic.version = 11 : i64} {
  func.func @_logit_fc_kernel(%arg0: i32, %arg1: i32, %arg2: memref<16x32xf32, #tpu.memory_space<vmem>>, %arg3: memref<32x64xbf16, #tpu.memory_space<vmem>>, %arg4: memref<1x64xf32, #tpu.memory_space<vmem>>, %arg5: memref<64x128xbf16, #tpu.memory_space<vmem>>, %arg6: memref<1x128xf32, #tpu.memory_space<vmem>>, %arg7: memref<16x128xf32, #tpu.memory_space<vmem>>, %arg8: memref<16x64xbf16, #tpu.memory_space<vmem>>) attributes {dimension_semantics = [#tpu.dimension_semantics<parallel>, #tpu.dimension_semantics<arbitrary>], iteration_bounds = array<i64: 1, 1>, scalar_prefetch = 0 : i64, scratch_operands = 1 : i64, tpu.core_type = #tpu.core_type<tc>, window_params = [{transform_indices = @transform_0, window_bounds = array<i64: 16, 32>}, {pipeline_mode = #tpu.pipeline_mode<synchronous>, transform_indices = @transform_1, window_bounds = array<i64: 32, 64>}, {pipeline_mode = #tpu.pipeline_mode<synchronous>, transform_indices = @transform_2, window_bounds = array<i64: 1, 64>}, {transform_indices = @transform_3, window_bounds = array<i64: 64, 128>}, {transform_indices = @transform_4, window_bounds = array<i64: 1, 128>}, {transform_indices = @transform_5, window_bounds = array<i64: 16, 128>}]} {
    %c0_i32 = arith.constant 0 : i32
    %0 = arith.cmpi eq, %arg1, %c0_i32 : i32
    %1 = arith.extui %0 : i1 to i32
    %c0_i32_0 = arith.constant 0 : i32
    %2 = arith.cmpi ne, %1, %c0_i32_0 : i32
    scf.if %2 {
      %c0_8 = arith.constant 0 : index
      %c0_9 = arith.constant 0 : index
      %10 = vector.load %arg2[%c0_8, %c0_9] : memref<16x32xf32, #tpu.memory_space<vmem>>, vector<16x32xf32>
      %11 = arith.truncf %10 : vector<16x32xf32> to vector<16x32xbf16>
      %c0_10 = arith.constant 0 : index
      %c0_11 = arith.constant 0 : index
      %12 = vector.load %arg3[%c0_10, %c0_11] : memref<32x64xbf16, #tpu.memory_space<vmem>>, vector<32x64xbf16>
      %cst_12 = arith.constant dense<0.000000e+00> : vector<16x64xf32>
      %13 = tpu.matmul %11, %12, %cst_12 {dimension_numbers = #tpu.dot_dimension_numbers<[1], [0], [0], [1], [0, 0, 1, 1], [], []>} : vector<16x32xbf16>, vector<32x64xbf16>, vector<16x64xf32> -> vector<16x64xf32>
      %c0_13 = arith.constant 0 : index
      %c0_14 = arith.constant 0 : index
      %14 = vector.load %arg4[%c0_13, %c0_14] : memref<1x64xf32, #tpu.memory_space<vmem>>, vector<1x64xf32>
      %15 = vector.broadcast %14 : vector<1x64xf32> to vector<16x64xf32>
      %16 = arith.addf %13, %15 : vector<16x64xf32>
      %cst_15 = arith.constant 5.000000e-01 : f32
      %17 = vector.broadcast %cst_15 : f32 to vector<16x64xf32>
      %18 = arith.mulf %17, %16 : vector<16x64xf32>
      %cst_16 = arith.constant 0.707106769 : f32
      %19 = vector.broadcast %cst_16 : f32 to vector<16x64xf32>
      %20 = arith.mulf %16, %19 : vector<16x64xf32>
      %21 = math.erf %20 : vector<16x64xf32>
      %cst_17 = arith.constant 1.000000e+00 : f32
      %22 = vector.broadcast %cst_17 : f32 to vector<16x64xf32>
      %23 = arith.addf %22, %21 : vector<16x64xf32>
      %24 = arith.mulf %18, %23 : vector<16x64xf32>
      %cst_18 = arith.constant dense<0.000000e+00> : vector<16xf32>
      %25 = vector.multi_reduction <add>, %24, %cst_18 [1] : vector<16x64xf32> to vector<16xf32>
      %26 = vector.shape_cast %25 : vector<16xf32> to vector<16x1xf32>
      %cst_19 = arith.constant 6.400000e+01 : f32
      %27 = vector.broadcast %cst_19 : f32 to vector<16x1xf32>
      %28 = arith.divf %26, %27 : vector<16x1xf32>
      %29 = vector.broadcast %28 : vector<16x1xf32> to vector<16x64xf32>
      %30 = arith.subf %24, %29 : vector<16x64xf32>
      %31 = arith.mulf %30, %30 : vector<16x64xf32>
      %cst_20 = arith.constant dense<0.000000e+00> : vector<16xf32>
      %32 = vector.multi_reduction <add>, %31, %cst_20 [1] : vector<16x64xf32> to vector<16xf32>
      %33 = vector.shape_cast %32 : vector<16xf32> to vector<16x1xf32>
      %cst_21 = arith.constant 6.400000e+01 : f32
      %34 = vector.broadcast %cst_21 : f32 to vector<16x1xf32>
      %35 = arith.divf %33, %34 : vector<16x1xf32>
      %cst_22 = arith.constant 9.99999996E-13 : f32
      %36 = vector.broadcast %cst_22 : f32 to vector<16x1xf32>
      %37 = arith.addf %35, %36 : vector<16x1xf32>
      %38 = math.rsqrt %37 : vector<16x1xf32>
      %39 = vector.broadcast %38 : vector<16x1xf32> to vector<16x64xf32>
      %40 = arith.mulf %30, %39 : vector<16x64xf32>
      %41 = arith.truncf %40 : vector<16x64xf32> to vector<16x64xbf16>
      %c0_23 = arith.constant 0 : index
      %c0_24 = arith.constant 0 : index
      %42 = vector.load %arg8[%c0_23, %c0_24] : memref<16x64xbf16, #tpu.memory_space<vmem>>, vector<16x64xbf16>
      tpu.vector_store %arg8[%c0_23, %c0_24], %41 {strides = array<i32>} : memref<16x64xbf16, #tpu.memory_space<vmem>>, vector<16x64xbf16>,
    } else {
    }
    %c0 = arith.constant 0 : index
    %c0_1 = arith.constant 0 : index
    %3 = vector.load %arg8[%c0, %c0_1] : memref<16x64xbf16, #tpu.memory_space<vmem>>, vector<16x64xbf16>
    %c0_2 = arith.constant 0 : index
    %c0_3 = arith.constant 0 : index
    %4 = vector.load %arg5[%c0_2, %c0_3] : memref<64x128xbf16, #tpu.memory_space<vmem>>, vector<64x128xbf16>
    %cst = arith.constant dense<0.000000e+00> : vector<16x128xf32>
    %5 = tpu.matmul %3, %4, %cst {dimension_numbers = #tpu.dot_dimension_numbers<[1], [0], [0], [1], [0, 0, 1, 1], [], []>} : vector<16x64xbf16>, vector<64x128xbf16>, vector<16x128xf32> -> vector<16x128xf32>
    %c0_4 = arith.constant 0 : index
    %c0_5 = arith.constant 0 : index
    %6 = vector.load %arg6[%c0_4, %c0_5] : memref<1x128xf32, #tpu.memory_space<vmem>>, vector<1x128xf32>
    %7 = vector.broadcast %6 : vector<1x128xf32> to vector<16x128xf32>
    %8 = arith.addf %5, %7 : vector<16x128xf32>
    %c0_6 = arith.constant 0 : index
    %c0_7 = arith.constant 0 : index
    %9 = vector.load %arg7[%c0_6, %c0_7] : memref<16x128xf32, #tpu.memory_space<vmem>>, vector<16x128xf32>
    tpu.vector_store %arg7[%c0_6, %c0_7], %8 {strides = array<i32>} : memref<16x128xf32, #tpu.memory_space<vmem>>, vector<16x128xf32>,
    return
  }
  func.func @transform_0(%arg0: i32, %arg1: i32) -> (i32, i32) {
    %c0_i32 = arith.constant 0 : i32
    %c0_i32_0 = arith.constant 0 : i32
    return %arg0, %c0_i32 : i32, i32
  }
  func.func @transform_1(%arg0: i32, %arg1: i32) -> (i32, i32) {
    %c0_i32 = arith.constant 0 : i32
    %c0_i32_0 = arith.constant 0 : i32
    %c0_i32_1 = arith.constant 0 : i32
    return %c0_i32, %c0_i32_0 : i32, i32
  }
  func.func @transform_2(%arg0: i32, %arg1: i32) -> (i32, i32) {
    %c0_i32 = arith.constant 0 : i32
    %c0_i32_0 = arith.constant 0 : i32
    %c0_i32_1 = arith.constant 0 : i32
    return %c0_i32, %c0_i32_0 : i32, i32
  }
  func.func @transform_3(%arg0: i32, %arg1: i32) -> (i32, i32) {
    %c0_i32 = arith.constant 0 : i32
    %c0_i32_0 = arith.constant 0 : i32
    return %c0_i32, %arg1 : i32, i32
  }
  func.func @transform_4(%arg0: i32, %arg1: i32) -> (i32, i32) {
    %c0_i32 = arith.constant 0 : i32
    %c0_i32_0 = arith.constant 0 : i32
    return %c0_i32, %arg1 : i32, i32
  }
  func.func @transform_5(%arg0: i32, %arg1: i32) -> (i32, i32) {
    %c0_i32 = arith.constant 0 : i32
    return %arg0, %arg1 : i32, i32
  }
}

module attributes {stable_mosaic.version = 11 : i64} {
  func.func @_logit_fc_kernel(%arg0: i32, %arg1: i32, %arg2: memref<16x32xf32, #tpu.memory_space<vmem>>, %arg3: memref<32x64xbf16, #tpu.memory_space<vmem>>, %arg4: memref<1x64xf32, #tpu.memory_space<vmem>>, %arg5: memref<64x128xbf16, #tpu.memory_space<vmem>>, %arg6: memref<1x128xf32, #tpu.memory_space<vmem>>, %arg7: memref<16x128xf32, #tpu.memory_space<vmem>>, %arg8: memref<16x64xbf16, #tpu.memory_space<vmem>>) attributes {dimension_semantics = [#tpu.dimension_semantics<parallel>, #tpu.dimension_semantics<arbitrary>], iteration_bounds = array<i64: 1, 1>, scalar_prefetch = 0 : i64, scratch_operands = 1 : i64, tpu.core_type = #tpu.core_type<tc>, window_params = [{transform_indices = @transform_0, window_bounds = array<i64: 16, 32>}, {pipeline_mode = #tpu.pipeline_mode<synchronous>, transform_indices = @transform_1, window_bounds = array<i64: 32, 64>}, {pipeline_mode = #tpu.pipeline_mode<synchronous>, transform_indices = @transform_2, window_bounds = array<i64: 1, 64>}, {transform_indices = @transform_3, window_bounds = array<i64: 64, 128>}, {transform_indices = @transform_4, window_bounds = array<i64: 1, 128>}, {transform_indices = @transform_5, window_bounds = array<i64: 16, 128>}]} {
    %c0_i32 = arith.constant 0 : i32
    %0 = arith.cmpi eq, %arg1, %c0_i32 : i32
    %1 = arith.extui %0 : i1 to i32
    %c0_i32_0 = arith.constant 0 : i32
    %2 = arith.cmpi ne, %1, %c0_i32_0 : i32
    scf.if %2 {
      %c0_8 = arith.constant 0 : index
      %c0_9 = arith.constant 0 : index
      %10 = vector.load %arg2[%c0_8, %c0_9] : memref<16x32xf32, #tpu.memory_space<vmem>>, vector<16x32xf32>
      %11 = arith.truncf %10 : vector<16x32xf32> to vector<16x32xbf16>
      %c0_10 = arith.constant 0 : index
      %c0_11 = arith.constant 0 : index
      %12 = vector.load %arg3[%c0_10, %c0_11] : memref<32x64xbf16, #tpu.memory_space<vmem>>, vector<32x64xbf16>
      %cst_12 = arith.constant dense<0.000000e+00> : vector<16x64xf32>
      %13 = tpu.matmul %11, %12, %cst_12 {dimension_numbers = #tpu.dot_dimension_numbers<[1], [0], [0], [1], [0, 0, 1, 1], [], []>} : vector<16x32xbf16>, vector<32x64xbf16>, vector<16x64xf32> -> vector<16x64xf32>
      %c0_13 = arith.constant 0 : index
      %c0_14 = arith.constant 0 : index
      %14 = vector.load %arg4[%c0_13, %c0_14] : memref<1x64xf32, #tpu.memory_space<vmem>>, vector<1x64xf32>
      %15 = vector.broadcast %14 : vector<1x64xf32> to vector<16x64xf32>
      %16 = arith.addf %13, %15 : vector<16x64xf32>
      %cst_15 = arith.constant 5.000000e-01 : f32
      %17 = vector.broadcast %cst_15 : f32 to vector<16x64xf32>
      %18 = arith.mulf %17, %16 : vector<16x64xf32>
      %cst_16 = arith.constant 0.707106769 : f32
      %19 = vector.broadcast %cst_16 : f32 to vector<16x64xf32>
      %20 = arith.mulf %16, %19 : vector<16x64xf32>
      %21 = math.erf %20 : vector<16x64xf32>
      %cst_17 = arith.constant 1.000000e+00 : f32
      %22 = vector.broadcast %cst_17 : f32 to vector<16x64xf32>
      %23 = arith.addf %22, %21 : vector<16x64xf32>
      %24 = arith.mulf %18, %23 : vector<16x64xf32>
      %cst_18 = arith.constant dense<0.000000e+00> : vector<16xf32>
      %25 = vector.multi_reduction <add>, %24, %cst_18 [1] : vector<16x64xf32> to vector<16xf32>
      %26 = vector.shape_cast %25 : vector<16xf32> to vector<16x1xf32>
      %cst_19 = arith.constant 6.400000e+01 : f32
      %27 = vector.broadcast %cst_19 : f32 to vector<16x1xf32>
      %28 = arith.divf %26, %27 : vector<16x1xf32>
      %29 = vector.broadcast %28 : vector<16x1xf32> to vector<16x64xf32>
      %30 = arith.subf %24, %29 : vector<16x64xf32>
      %31 = arith.mulf %30, %30 : vector<16x64xf32>
      %cst_20 = arith.constant dense<0.000000e+00> : vector<16xf32>
      %32 = vector.multi_reduction <add>, %31, %cst_20 [1] : vector<16x64xf32> to vector<16xf32>
      %33 = vector.shape_cast %32 : vector<16xf32> to vector<16x1xf32>
      %cst_21 = arith.constant 6.400000e+01 : f32
      %34 = vector.broadcast %cst_21 : f32 to vector<16x1xf32>
      %35 = arith.divf %33, %34 : vector<16x1xf32>
      %cst_22 = arith.constant 9.99999996E-13 : f32
      %36 = vector.broadcast %cst_22 : f32 to vector<16x1xf32>
      %37 = arith.addf %35, %36 : vector<16x1xf32>
      %38 = math.rsqrt %37 : vector<16x1xf32>
      %39 = vector.broadcast %38 : vector<16x1xf32> to vector<16x64xf32>
      %40 = arith.mulf %30, %39 : vector<16x64xf32>
      %41 = arith.truncf %40 : vector<16x64xf32> to vector<16x64xbf16>
      %c0_23 = arith.constant 0 : index
      %c0_24 = arith.constant 0 : index
      %42 = vector.load %arg8[%c0_23, %c0_24] : memref<16x64xbf16, #tpu.memory_space<vmem>>, vector<16x64xbf16>
      tpu.vector_store %arg8[%c0_23, %c0_24], %41 {strides = array<i32>} : memref<16x64xbf16, #tpu.memory_space<vmem>>, vector<16x64xbf16>,
    } else {
    }
    %c0 = arith.constant 0 : index
    %c0_1 = arith.constant 0 : index
    %3 = vector.load %arg8[%c0, %c0_1] : memref<16x64xbf16, #tpu.memory_space<vmem>>, vector<16x64xbf16>
    %c0_2 = arith.constant 0 : index
    %c0_3 = arith.constant 0 : index
    %4 = vector.load %arg5[%c0_2, %c0_3] : memref<64x128xbf16, #tpu.memory_space<vmem>>, vector<64x128xbf16>
    %cst = arith.constant dense<0.000000e+00> : vector<16x128xf32>
    %5 = tpu.matmul %3, %4, %cst {dimension_numbers = #tpu.dot_dimension_numbers<[1], [0], [0], [1], [0, 0, 1, 1], [], []>} : vector<16x64xbf16>, vector<64x128xbf16>, vector<16x128xf32> -> vector<16x128xf32>
    %c0_4 = arith.constant 0 : index
    %c0_5 = arith.constant 0 : index
    %6 = vector.load %arg6[%c0_4, %c0_5] : memref<1x128xf32, #tpu.memory_space<vmem>>, vector<1x128xf32>
    %7 = vector.broadcast %6 : vector<1x128xf32> to vector<16x128xf32>
    %8 = arith.addf %5, %7 : vector<16x128xf32>
    %c0_6 = arith.constant 0 : index
    %c0_7 = arith.constant 0 : index
    %9 = vector.load %arg7[%c0_6, %c0_7] : memref<16x128xf32, #tpu.memory_space<vmem>>, vector<16x128xf32>
    tpu.vector_store %arg7[%c0_6, %c0_7], %8 {strides = array<i32>} : memref<16x128xf32, #tpu.memory_space<vmem>>, vector<16x128xf32>,
    return
  }
  func.func @transform_0(%arg0: i32, %arg1: i32) -> (i32, i32) {
    %c0_i32 = arith.constant 0 : i32
    %c0_i32_0 = arith.constant 0 : i32
    return %arg0, %c0_i32 : i32, i32
  }
  func.func @transform_1(%arg0: i32, %arg1: i32) -> (i32, i32) {
    %c0_i32 = arith.constant 0 : i32
    %c0_i32_0 = arith.constant 0 : i32
    %c0_i32_1 = arith.constant 0 : i32
    return %c0_i32, %c0_i32_0 : i32, i32
  }
  func.func @transform_2(%arg0: i32, %arg1: i32) -> (i32, i32) {
    %c0_i32 = arith.constant 0 : i32
    %c0_i32_0 = arith.constant 0 : i32
    %c0_i32_1 = arith.constant 0 : i32
    return %c0_i32, %c0_i32_0 : i32, i32
  }
  func.func @transform_3(%arg0: i32, %arg1: i32) -> (i32, i32) {
    %c0_i32 = arith.constant 0 : i32
    %c0_i32_0 = arith.constant 0 : i32
    return %c0_i32, %arg1 : i32, i32
  }
  func.func @transform_4(%arg0: i32, %arg1: i32) -> (i32, i32) {
    %c0_i32 = arith.constant 0 : i32
    %c0_i32_0 = arith.constant 0 : i32
    return %c0_i32, %arg1 : i32, i32
  }
  func.func @transform_5(%arg0: i32, %arg1: i32) -> (i32, i32) {
    %c0_i32 = arith.constant 0 : i32
    return %arg0, %arg1 : i32, i32
  }
}

</mosaic_0001>

<bundles_post_ra>
// kernel: tpu_custom_call.1
= control target key start
LH: loop header
LB: loop body
LE: loop exit
PB: predicated region body
PF: predicated region fallthrough
CT: control target
= control target key end

     0   :  { %10 = vsyncpa [#allocation4], 0  ;;  %s521_s0 = inlined_call_operand.hbm [shape: f32[16,32], index: 0, kind: input, shape index: {}]   ;;  %s522_s1 = inlined_call_operand.hbm [shape: bf16[32,64], index: 1, kind: input, shape index: {}]   ;;  %s523_s2 = inlined_call_operand.vmem [shape: f32[1,64], index: 2, kind: input, shape index: {}]   ;;  %s524_s3 = inlined_call_operand.hbm [shape: bf16[64,128], index: 3, kind: input, shape index: {}]   ;;  %s525_s4 = inlined_call_operand.vmem [shape: f32[1,128], index: 4, kind: input, shape index: {}]   ;;  %s526_s5 = inlined_call_operand.hbm [shape: f32[16,128], index: 5, kind: output, shape index: {}]  }
   0x1   :  { %11 = vsyncpa [#allocation7], 0 }
   0x2   :  { %12 = vsyncpa [#allocation5], 0  ;;  %s452_s18 = smov [#allocation6]  }
   0x3   :  { %s30_s19 = sshll.u32 %s452_s18, 4  ;;  %s31_s19 = int_to_ptr.vmem [resolvable:$true] %s30_s19 }
   0x4   :  { %s374_s20 = scalar_lea.vmem %s31_s19, 256  ;;  %p379_p1 = scmp.lt.s32.totalorder %s31_s19, %s31_s19 }
   0x5   :  { %p375_p0 = scmp.ne.s32.totalorder %s31_s19, %s374_s20  ;;  %p380_p2 = scmp.lt.s32.totalorder %s374_s20, %s374_s20 }
   0x7   :  { %p381_p3 = por %p380_p2, %p379_p1 }
   0x9   :  { %p382_p4 = pnand %p381_p3, %p375_p0 }
   0xb   :  { %385 = shalt.err (!%p382_p4)
}
   0xc   :  { %s453_s21 = smov 64   ;;  %s454_s22 = smov 4  }
   0xd   :  { %36 = dma.hbm_to_vmem [thread:$0]  %s522_s1, 256, %s31_s19, [#allocation7], %s453_s21, %s453_s21, %s454_s22  }
   0xe   :  { %s455_s25 = smov [#allocation3]  }
   0xf   :  { %s18_s26 = sshll.u32 %s455_s25, 4  ;;  %s19_s26 = int_to_ptr.vmem [resolvable:$true] %s18_s26 }
  0x10   :  { %s394_s27 = scalar_lea.vmem %s19_s26, 256  ;;  %p399_p6 = scmp.lt.s32.totalorder %s19_s26, %s19_s26 }
  0x11   :  { %p395_p5 = scmp.ne.s32.totalorder %s19_s26, %s394_s27  ;;  %p400_p7 = scmp.lt.s32.totalorder %s394_s27, %s394_s27 }
  0x13   :  { %p401_p8 = por %p400_p7, %p399_p6 }
  0x15   :  { %p402_p9 = pnand %p401_p8, %p395_p5 }
  0x17   :  { %405 = shalt.err (!%p402_p9)
}
  0x18   :  { %s456_s28 = smov 128   ;;  %s457_s29 = smov 8  }
  0x19   :  { %24 = dma.hbm_to_vmem [thread:$0]  %s521_s0, 256, %s19_s26, [#allocation4], %s456_s28, %s456_s28, %s457_s29  }
  0x1a   :  { %s458_s1 = smov [#allocation8]  }
  0x1b   :  { %s44_s7 = sshll.u32 %s458_s1, 4  ;;  %s45_s7 = int_to_ptr.vmem [resolvable:$true] %s44_s7 }
  0x1c   :  { %s414_s8 = scalar_lea.vmem %s45_s7, 512  ;;  %p419_p11 = scmp.lt.s32.totalorder %s45_s7, %s45_s7 }
  0x1d   :  { %p415_p10 = scmp.ne.s32.totalorder %s45_s7, %s414_s8  ;;  %p420_p12 = scmp.lt.s32.totalorder %s414_s8, %s414_s8 }
  0x1f   :  { %p421_p13 = por %p420_p12, %p419_p11 }
  0x21   :  { %p422_p0 = pnand %p421_p13, %p415_p10 }
  0x23   :  { %425 = shalt.err (!%p422_p0)
}
  0x24   :  { %50 = dma.hbm_to_vmem [thread:$0]  %s524_s3, 512, %s45_s7, [#allocation7], %s453_s21, %s453_s21, %s454_s22  }
  0x25   :  { %446 = dma.done.wait [#allocation4], 256  }
  0x26   :  { %447 = vsyncadd [#allocation4], 4294967040 }
  0x27   :  { %448 = dma.done.wait [#allocation7], 768  }
  0x28   :  { %449 = vsyncadd [#allocation7], 4294966528  ;;  %v459_v0 = vmov 0.0   ;;  %vm460_vm0 = vmmov 0   ;;  %v351_v1 = vld [vmem:[#allocation6 + $0x8] sm:$0xff]   ;;  %v352_v2 = vld [vmem:[#allocation6] sm:$0xff]  }
  0x29   :  { %321 = vmatprep.subr.bf16.mxu0 %v459_v0  ;;  %325 = vmatprep.mubr.msk.bf16.mxu0 %vm460_vm0, %v459_v0  ;;  %v67_v3 = vld [vmem:[#allocation3] sm:$0xff]  ;;  %v68_v4 = vld [vmem:[#allocation3 + $0x8] sm:$0xff]  ;;  %vm93_vm1 = vcmask 261120   ;;  %v298_v6 = vld [vmem:[%s523_s2] ss:$0 sm:$0xff]  ;;  %vm148_vm2 = vcmask 523264  }
  0x2a   :  { %329 = vmatprep.subr.bf16.mxu1 %v459_v0  ;;  %337 = vmatprep.mubr.msk.bf16.mxu1 %vm460_vm0, %v459_v0  ;;  %v69_v5 = vpack.c.bf16 %v68_v4, %v67_v3  ;;  %v353_v35 = vld [vmem:[#allocation8 + $0x18] sm:$0xff]   ;;  %v354_v36 = vld [vmem:[#allocation8 + $0x10] sm:$0xff]   ;;  %v355_v37 = vld [vmem:[#allocation8 + $0x8] sm:$0xff]   ;;  %vm184_vm3 = vcmask 519168   ;;  %s461_s12 = smov [#allocation9]  }
  0x2b   :  { %322 = vmatpush3.bf16.msra.mxu0 %v351_v1  ;;  %330 = vmatpush3.bf16.msra.mxu1 %v353_v35  ;;  %v356_v38 = vld [vmem:[#allocation8] sm:$0xff]   ;;  %v304_v52 = vld [vmem:[%s525_s4] ss:$0 sm:$0xff]  ;;  %s285_s13 = sshll.u32 %s461_s12, 4  ;;  %s286_s13 = int_to_ptr.vmem [resolvable:$true] %s285_s13 }
  0x2c   :  { %323 = vmatprep.subr.bf16.mxu0 %v459_v0  ;;  %331 = vmatprep.subr.bf16.mxu1 %v459_v0  ;;  %s426_s14 = scalar_lea.vmem %s286_s13, 256  ;;  %p431_p2 = scmp.lt.s32.totalorder %s286_s13, %s286_s13 }
  0x2d   :  { %p427_p1 = scmp.ne.s32.totalorder %s286_s13, %s426_s14  ;;  %p432_p3 = scmp.lt.s32.totalorder %s426_s14, %s426_s14 }
  0x2f   :  { %324 = vmatpush3.bf16.msra.mxu0 %v352_v2  ;;  %332 = vmatpush3.bf16.msra.mxu1 %v354_v36  ;;  %p433_p4 = por %p432_p3, %p431_p2 }
  0x30   :  { %333 = vmatprep.subr.bf16.mxu1 %v459_v0 }
  0x31   :  { %p434_p5 = pnand %p433_p4, %p427_p1 }
  0x32   :  { %326 = vmatmul.mubr.msk.bf16.vlgmr.msra.gmra.mxu0 %vm93_vm1, %v69_v5 }
  0x33   :  { %334 = vmatpush3.bf16.msra.mxu1 %v355_v37 }
  0x34   :  { %335 = vmatprep.subr.bf16.mxu1 %v459_v0 }
  0x37   :  { %336 = vmatpush3.bf16.msra.mxu1 %v356_v38 }
  0xf2   :  { %v131_v7 = vpop.f32.mrf.mxu0 }
  0xf3   :  { %v132_v8 = vadd.f32 %v298_v6, %v131_v7 }
  0xf4   :  { %v327_v9 = vpop.f32.mrf.mxu0 }
  0xf5   :  { %v140_v10 = vmul.f32 0.70710677, %v132_v8  ;;  %v138_v16 = vmul.f32 0.5, %v132_v8 }
  0xf6   :  { %v134_v11 = vpop.f32.mrf.mxu0 }
  0xf7   :  { %358 = verf.f32 %v140_v10  ;;  %v135_v12 = vadd.f32 %v298_v6, %v134_v11 }
  0xf8   :  { %v328_v13 = vpop.f32.mrf.mxu0 }
  0xf9   :  { %v141_v14 = vmul.f32 0.70710677, %v135_v12  ;;  %v139_v20 = vmul.f32 0.5, %v135_v12 }
  0xfb   :  { %360 = verf.f32 %v141_v14 }
 0x104   :  { %v359_v15 = vpop.eup %358 }
 0x105   :  { %v144_v17 = vadd.f32 1.0, %v359_v15 }
 0x107   :  { %v146_v18 = vmul.f32 %v144_v17, %v138_v16 }
 0x108   :  { %v361_v19 = vpop.eup %360 }
 0x109   :  { %v149_v21 = vsel %vm148_vm2, %v146_v18, 0.0  ;;  %v145_v22 = vadd.f32 1.0, %v361_v19 }
 0x10a   :  { %150 = vadd.xlane.f32.xlu0 %v149_v21 }
 0x10b   :  { %v147_v23 = vmul.f32 %v145_v22, %v139_v20 }
 0x10d   :  { %v152_v24 = vsel %vm148_vm2, %v147_v23, 0.0 }
 0x10e   :  { %153 = vadd.xlane.f32.xlu0 %v152_v24 }
 0x193   :  { %v151_v25 = vpop.xlane.xlu0 %150 }
 0x194   :  { %v156_v26 = vmul.f32 0.015625, %v151_v25 }
 0x196   :  { %v158_v27 = vsub.f32 %v146_v18, %v156_v26 }
 0x197   :  { %v154_v28 = vpop.xlane.xlu0 %153 }
 0x198   :  { %v157_v29 = vmul.f32 0.015625, %v154_v28  ;;  %v160_v30 = vmul.f32 %v158_v27, %v158_v27 }
 0x19a   :  { %v159_v31 = vsub.f32 %v147_v23, %v157_v29  ;;  %v162_v32 = vsel %vm148_vm2, %v160_v30, 0.0 }
 0x19b   :  { %163 = vadd.xlane.f32.xlu1 %v162_v32 }
 0x19c   :  { %v161_v33 = vmul.f32 %v159_v31, %v159_v31 }
 0x19e   :  { %v165_v34 = vsel %vm148_vm2, %v161_v33, 0.0 }
 0x19f   :  { %166 = vadd.xlane.f32.xlu1 %v165_v34 }
 0x224   :  { %v164_v39 = vpop.xlane.xlu1 %163 }
 0x225   :  { %v168_v40 = vmul.f32 0.015625, %v164_v39 }
 0x227   :  { %v170_v41 = vadd.f32 1e-12, %v168_v40 }
 0x228   :  { %v167_v42 = vpop.xlane.xlu1 %166 }
 0x229   :  { %362 = vrsqrt.f32 %v170_v41  ;;  %v169_v43 = vmul.f32 0.015625, %v167_v42 }
 0x22b   :  { %v171_v44 = vadd.f32 1e-12, %v169_v43 }
 0x22d   :  { %364 = vrsqrt.f32 %v171_v44 }
 0x236   :  { %v363_v45 = vpop.eup %362 }
 0x237   :  { %v174_v46 = vmul.f32 %v363_v45, %v158_v27 }
 0x239   :  { %v311_v47 = vpack.c.bf16 %v174_v46, %v174_v46 }
 0x23a   :  { %v365_v48 = vpop.eup %364 }
 0x23b   :  { %185 = vst.msk [vmem:[#allocation2] sm:$0xf] %vm184_vm3, %v311_v47  ;;  %v175_v49 = vmul.f32 %v365_v48, %v159_v31 }
 0x23d   :  { %v312_v50 = vpack.c.bf16 %v175_v49, %v175_v49 }
 0x23f   :  { %186 = vst.msk [vmem:[#allocation2 + $0x4] sm:$0xf] %vm184_vm3, %v312_v50 }
 0x246   :  { %v357_v51 = vld [vmem:[#allocation2] sm:$0xff]  }
 0x247   :  { %338 = vmatmul.mubr.msk.bf16.vlgmr.msra.gmra.mxu1 %vm148_vm2, %v357_v51 }
 0x307   :  { %v271_v53 = vpop.f32.mrf.mxu1 }
 0x308   :  { %v272_v54 = vadd.f32 %v304_v52, %v271_v53 }
 0x309   :  { %v339_v55 = vpop.f32.mrf.mxu1 }
 0x30a   :  { %278 = vst [vmem:[#allocation9] sm:$0xff] %v272_v54 }
 0x30b   :  { %v274_v56 = vpop.f32.mrf.mxu1 }
 0x30c   :  { %v275_v57 = vadd.f32 %v304_v52, %v274_v56 }
 0x30d   :  { %v340_v58 = vpop.f32.mrf.mxu1 }
 0x30e   :  { %279 = vst [vmem:[#allocation9 + $0x8] sm:$0xff] %v275_v57 }
 0x30f   :  { %437 = shalt.err (!%p434_p5)
}
 0x310   :  { %291 = dma.vmem_to_hbm [thread:$0]  %s286_s13, 256, %s526_s5, [#allocation5], %s456_s28, %s456_s28, %s457_s29  }
 0x311   :  { %450 = dma.done.wait [#allocation5], 256  }
 0x312   :  { %451 = vsyncadd [#allocation5], 4294967040 }
 0x313   :  { %295 = vsyncpa [#allocation4], 1 }
 0x314   :  { %296 = vsyncpa [#allocation7], 1 }
 0x315   :  { %297 = vsyncpa [#allocation5], 1 }

// kernel: tpu_custom_call.1
= control target key start
LH: loop header
LB: loop body
LE: loop exit
PB: predicated region body
PF: predicated region fallthrough
CT: control target
= control target key end

     0   :  { %10 = vsyncpa [#allocation4], 0  ;;  %s521_s0 = inlined_call_operand.hbm [shape: f32[16,32], index: 0, kind: input, shape index: {}]   ;;  %s522_s1 = inlined_call_operand.hbm [shape: bf16[32,64], index: 1, kind: input, shape index: {}]   ;;  %s523_s2 = inlined_call_operand.vmem [shape: f32[1,64], index: 2, kind: input, shape index: {}]   ;;  %s524_s3 = inlined_call_operand.hbm [shape: bf16[64,128], index: 3, kind: input, shape index: {}]   ;;  %s525_s4 = inlined_call_operand.vmem [shape: f32[1,128], index: 4, kind: input, shape index: {}]   ;;  %s526_s5 = inlined_call_operand.hbm [shape: f32[16,128], index: 5, kind: output, shape index: {}]  }
   0x1   :  { %11 = vsyncpa [#allocation7], 0 }
   0x2   :  { %12 = vsyncpa [#allocation5], 0  ;;  %s452_s18 = smov [#allocation6]  }
   0x3   :  { %s30_s19 = sshll.u32 %s452_s18, 4  ;;  %s31_s19 = int_to_ptr.vmem [resolvable:$true] %s30_s19 }
   0x4   :  { %s374_s20 = scalar_lea.vmem %s31_s19, 256  ;;  %p379_p1 = scmp.lt.s32.totalorder %s31_s19, %s31_s19 }
   0x5   :  { %p375_p0 = scmp.ne.s32.totalorder %s31_s19, %s374_s20  ;;  %p380_p2 = scmp.lt.s32.totalorder %s374_s20, %s374_s20 }
   0x7   :  { %p381_p3 = por %p380_p2, %p379_p1 }
   0x9   :  { %p382_p4 = pnand %p381_p3, %p375_p0 }
   0xb   :  { %385 = shalt.err (!%p382_p4)
}
   0xc   :  { %s453_s21 = smov 64   ;;  %s454_s22 = smov 4  }
   0xd   :  { %36 = dma.hbm_to_vmem [thread:$0]  %s522_s1, 256, %s31_s19, [#allocation7], %s453_s21, %s453_s21, %s454_s22  }
   0xe   :  { %s455_s25 = smov [#allocation3]  }
   0xf   :  { %s18_s26 = sshll.u32 %s455_s25, 4  ;;  %s19_s26 = int_to_ptr.vmem [resolvable:$true] %s18_s26 }
  0x10   :  { %s394_s27 = scalar_lea.vmem %s19_s26, 256  ;;  %p399_p6 = scmp.lt.s32.totalorder %s19_s26, %s19_s26 }
  0x11   :  { %p395_p5 = scmp.ne.s32.totalorder %s19_s26, %s394_s27  ;;  %p400_p7 = scmp.lt.s32.totalorder %s394_s27, %s394_s27 }
  0x13   :  { %p401_p8 = por %p400_p7, %p399_p6 }
  0x15   :  { %p402_p9 = pnand %p401_p8, %p395_p5 }
  0x17   :  { %405 = shalt.err (!%p402_p9)
}
  0x18   :  { %s456_s28 = smov 128   ;;  %s457_s29 = smov 8  }
  0x19   :  { %24 = dma.hbm_to_vmem [thread:$0]  %s521_s0, 256, %s19_s26, [#allocation4], %s456_s28, %s456_s28, %s457_s29  }
  0x1a   :  { %s458_s1 = smov [#allocation8]  }
  0x1b   :  { %s44_s7 = sshll.u32 %s458_s1, 4  ;;  %s45_s7 = int_to_ptr.vmem [resolvable:$true] %s44_s7 }
  0x1c   :  { %s414_s8 = scalar_lea.vmem %s45_s7, 512  ;;  %p419_p11 = scmp.lt.s32.totalorder %s45_s7, %s45_s7 }
  0x1d   :  { %p415_p10 = scmp.ne.s32.totalorder %s45_s7, %s414_s8  ;;  %p420_p12 = scmp.lt.s32.totalorder %s414_s8, %s414_s8 }
  0x1f   :  { %p421_p13 = por %p420_p12, %p419_p11 }
  0x21   :  { %p422_p0 = pnand %p421_p13, %p415_p10 }
  0x23   :  { %425 = shalt.err (!%p422_p0)
}
  0x24   :  { %50 = dma.hbm_to_vmem [thread:$0]  %s524_s3, 512, %s45_s7, [#allocation7], %s453_s21, %s453_s21, %s454_s22  }
  0x25   :  { %446 = dma.done.wait [#allocation4], 256  }
  0x26   :  { %447 = vsyncadd [#allocation4], 4294967040 }
  0x27   :  { %448 = dma.done.wait [#allocation7], 768  }
  0x28   :  { %449 = vsyncadd [#allocation7], 4294966528  ;;  %v459_v0 = vmov 0.0   ;;  %vm460_vm0 = vmmov 0   ;;  %v351_v1 = vld [vmem:[#allocation6 + $0x8] sm:$0xff]   ;;  %v352_v2 = vld [vmem:[#allocation6] sm:$0xff]  }
  0x29   :  { %321 = vmatprep.subr.bf16.mxu0 %v459_v0  ;;  %325 = vmatprep.mubr.msk.bf16.mxu0 %vm460_vm0, %v459_v0  ;;  %v67_v3 = vld [vmem:[#allocation3] sm:$0xff]  ;;  %v68_v4 = vld [vmem:[#allocation3 + $0x8] sm:$0xff]  ;;  %vm93_vm1 = vcmask 261120   ;;  %v298_v6 = vld [vmem:[%s523_s2] ss:$0 sm:$0xff]  ;;  %vm148_vm2 = vcmask 523264  }
  0x2a   :  { %329 = vmatprep.subr.bf16.mxu1 %v459_v0  ;;  %337 = vmatprep.mubr.msk.bf16.mxu1 %vm460_vm0, %v459_v0  ;;  %v69_v5 = vpack.c.bf16 %v68_v4, %v67_v3  ;;  %v353_v35 = vld [vmem:[#allocation8 + $0x18] sm:$0xff]   ;;  %v354_v36 = vld [vmem:[#allocation8 + $0x10] sm:$0xff]   ;;  %v355_v37 = vld [vmem:[#allocation8 + $0x8] sm:$0xff]   ;;  %vm184_vm3 = vcmask 519168   ;;  %s461_s12 = smov [#allocation9]  }
  0x2b   :  { %322 = vmatpush3.bf16.msra.mxu0 %v351_v1  ;;  %330 = vmatpush3.bf16.msra.mxu1 %v353_v35  ;;  %v356_v38 = vld [vmem:[#allocation8] sm:$0xff]   ;;  %v304_v52 = vld [vmem:[%s525_s4] ss:$0 sm:$0xff]  ;;  %s285_s13 = sshll.u32 %s461_s12, 4  ;;  %s286_s13 = int_to_ptr.vmem [resolvable:$true] %s285_s13 }
  0x2c   :  { %323 = vmatprep.subr.bf16.mxu0 %v459_v0  ;;  %331 = vmatprep.subr.bf16.mxu1 %v459_v0  ;;  %s426_s14 = scalar_lea.vmem %s286_s13, 256  ;;  %p431_p2 = scmp.lt.s32.totalorder %s286_s13, %s286_s13 }
  0x2d   :  { %p427_p1 = scmp.ne.s32.totalorder %s286_s13, %s426_s14  ;;  %p432_p3 = scmp.lt.s32.totalorder %s426_s14, %s426_s14 }
  0x2f   :  { %324 = vmatpush3.bf16.msra.mxu0 %v352_v2  ;;  %332 = vmatpush3.bf16.msra.mxu1 %v354_v36  ;;  %p433_p4 = por %p432_p3, %p431_p2 }
  0x30   :  { %333 = vmatprep.subr.bf16.mxu1 %v459_v0 }
  0x31   :  { %p434_p5 = pnand %p433_p4, %p427_p1 }
  0x32   :  { %326 = vmatmul.mubr.msk.bf16.vlgmr.msra.gmra.mxu0 %vm93_vm1, %v69_v5 }
  0x33   :  { %334 = vmatpush3.bf16.msra.mxu1 %v355_v37 }
  0x34   :  { %335 = vmatprep.subr.bf16.mxu1 %v459_v0 }
  0x37   :  { %336 = vmatpush3.bf16.msra.mxu1 %v356_v38 }
  0xf2   :  { %v131_v7 = vpop.f32.mrf.mxu0 }
  0xf3   :  { %v132_v8 = vadd.f32 %v298_v6, %v131_v7 }
  0xf4   :  { %v327_v9 = vpop.f32.mrf.mxu0 }
  0xf5   :  { %v140_v10 = vmul.f32 0.70710677, %v132_v8  ;;  %v138_v16 = vmul.f32 0.5, %v132_v8 }
  0xf6   :  { %v134_v11 = vpop.f32.mrf.mxu0 }
  0xf7   :  { %358 = verf.f32 %v140_v10  ;;  %v135_v12 = vadd.f32 %v298_v6, %v134_v11 }
  0xf8   :  { %v328_v13 = vpop.f32.mrf.mxu0 }
  0xf9   :  { %v141_v14 = vmul.f32 0.70710677, %v135_v12  ;;  %v139_v20 = vmul.f32 0.5, %v135_v12 }
  0xfb   :  { %360 = verf.f32 %v141_v14 }
 0x104   :  { %v359_v15 = vpop.eup %358 }
 0x105   :  { %v144_v17 = vadd.f32 1.0, %v359_v15 }
 0x107   :  { %v146_v18 = vmul.f32 %v144_v17, %v138_v16 }
 0x108   :  { %v361_v19 = vpop.eup %360 }
 0x109   :  { %v149_v21 = vsel %vm148_vm2, %v146_v18, 0.0  ;;  %v145_v22 = vadd.f32 1.0, %v361_v19 }
 0x10a   :  { %150 = vadd.xlane.f32.xlu0 %v149_v21 }
 0x10b   :  { %v147_v23 = vmul.f32 %v145_v22, %v139_v20 }
 0x10d   :  { %v152_v24 = vsel %vm148_vm2, %v147_v23, 0.0 }
 0x10e   :  { %153 = vadd.xlane.f32.xlu0 %v152_v24 }
 0x193   :  { %v151_v25 = vpop.xlane.xlu0 %150 }
 0x194   :  { %v156_v26 = vmul.f32 0.015625, %v151_v25 }
 0x196   :  { %v158_v27 = vsub.f32 %v146_v18, %v156_v26 }
 0x197   :  { %v154_v28 = vpop.xlane.xlu0 %153 }
 0x198   :  { %v157_v29 = vmul.f32 0.015625, %v154_v28  ;;  %v160_v30 = vmul.f32 %v158_v27, %v158_v27 }
 0x19a   :  { %v159_v31 = vsub.f32 %v147_v23, %v157_v29  ;;  %v162_v32 = vsel %vm148_vm2, %v160_v30, 0.0 }
 0x19b   :  { %163 = vadd.xlane.f32.xlu1 %v162_v32 }
 0x19c   :  { %v161_v33 = vmul.f32 %v159_v31, %v159_v31 }
 0x19e   :  { %v165_v34 = vsel %vm148_vm2, %v161_v33, 0.0 }
 0x19f   :  { %166 = vadd.xlane.f32.xlu1 %v165_v34 }
 0x224   :  { %v164_v39 = vpop.xlane.xlu1 %163 }
 0x225   :  { %v168_v40 = vmul.f32 0.015625, %v164_v39 }
 0x227   :  { %v170_v41 = vadd.f32 1e-12, %v168_v40 }
 0x228   :  { %v167_v42 = vpop.xlane.xlu1 %166 }
 0x229   :  { %362 = vrsqrt.f32 %v170_v41  ;;  %v169_v43 = vmul.f32 0.015625, %v167_v42 }
 0x22b   :  { %v171_v44 = vadd.f32 1e-12, %v169_v43 }
 0x22d   :  { %364 = vrsqrt.f32 %v171_v44 }
 0x236   :  { %v363_v45 = vpop.eup %362 }
 0x237   :  { %v174_v46 = vmul.f32 %v363_v45, %v158_v27 }
 0x239   :  { %v311_v47 = vpack.c.bf16 %v174_v46, %v174_v46 }
 0x23a   :  { %v365_v48 = vpop.eup %364 }
 0x23b   :  { %185 = vst.msk [vmem:[#allocation2] sm:$0xf] %vm184_vm3, %v311_v47  ;;  %v175_v49 = vmul.f32 %v365_v48, %v159_v31 }
 0x23d   :  { %v312_v50 = vpack.c.bf16 %v175_v49, %v175_v49 }
 0x23f   :  { %186 = vst.msk [vmem:[#allocation2 + $0x4] sm:$0xf] %vm184_vm3, %v312_v50 }
 0x246   :  { %v357_v51 = vld [vmem:[#allocation2] sm:$0xff]  }
 0x247   :  { %338 = vmatmul.mubr.msk.bf16.vlgmr.msra.gmra.mxu1 %vm148_vm2, %v357_v51 }
 0x307   :  { %v271_v53 = vpop.f32.mrf.mxu1 }
 0x308   :  { %v272_v54 = vadd.f32 %v304_v52, %v271_v53 }
 0x309   :  { %v339_v55 = vpop.f32.mrf.mxu1 }
 0x30a   :  { %278 = vst [vmem:[#allocation9] sm:$0xff] %v272_v54 }
 0x30b   :  { %v274_v56 = vpop.f32.mrf.mxu1 }
 0x30c   :  { %v275_v57 = vadd.f32 %v304_v52, %v274_v56 }
 0x30d   :  { %v340_v58 = vpop.f32.mrf.mxu1 }
 0x30e   :  { %279 = vst [vmem:[#allocation9 + $0x8] sm:$0xff] %v275_v57 }
 0x30f   :  { %437 = shalt.err (!%p434_p5)
}
 0x310   :  { %291 = dma.vmem_to_hbm [thread:$0]  %s286_s13, 256, %s526_s5, [#allocation5], %s456_s28, %s456_s28, %s457_s29  }
 0x311   :  { %450 = dma.done.wait [#allocation5], 256  }
 0x312   :  { %451 = vsyncadd [#allocation5], 4294967040 }
 0x313   :  { %295 = vsyncpa [#allocation4], 1 }
 0x314   :  { %296 = vsyncpa [#allocation7], 1 }
 0x315   :  { %297 = vsyncpa [#allocation5], 1 }

</bundles_post_ra>
